<compile_context>
chip_gen: v7x
topology: tpu7x:2x2x1
jax: 0.10.0
libtpu: 0.0.40
codegen_flags: <defaults>
</compile_context>

<pallas_src>
import math

import jax
import jax.numpy as jnp
import numpy as np
from jax import lax
from jax.experimental import pallas as pl
from jax.experimental.pallas import tpu as pltpu

MIU = 1.0
CLASSES = 3

_TARGET_BLOCK_ELEMS = 128 * 1024      # ~512 KiB of f32 per input block
_VMEM_LIMIT_BYTES = 48 * 1024 * 1024  # safe on v5e/v6e (128 MiB) and v7x (64 MiB)


def _is_pow2(n):
    return n > 0 and (n & (n - 1)) == 0


def _plan_fast_layout(P, H, W):
    """Plan the packed, multi-plane layout.

    Returns (L, rows_per_plane, padded_P, planes_per_block) or None if the
    simple per-plane fallback should be used.
    """
    if not (_is_pow2(H) and _is_pow2(W)) or H * W < 128:
        return None
    L = W if W >= 128 else 128          # lane width of the flattened layout
    rpp = (H * W) // L                  # flattened rows per plane (power of 2)
    # planes-per-block granularity so every block has a multiple of 8 rows
    g = 8 // math.gcd(rpp, 8)
    candidates = [d for d in range(1, P + 1) if P % d == 0 and d % g == 0]
    if candidates:
        pad_P = P                       # no padding needed
    else:
        pad_P = ((P + g - 1) // g) * g  # pad plane count with all-zero planes
        candidates = [d for d in range(1, pad_P + 1)
                      if pad_P % d == 0 and d % g == 0]
    rows_target = max(8, _TARGET_BLOCK_ELEMS // L)
    best = candidates[-1]
    for d in sorted(candidates):
        if d * rpp >= rows_target:      # smallest group hitting the block target
            best = d
            break
    return L, rpp, pad_P, best


def _make_kernel(H, W, L, TR):
    """Kernel over a 2-D (TR, L) view of row-major-flattened (H, W) planes.

    L == W : plain layout, one or more whole planes stacked along sublanes.
    L  > W : packed layout (W | L, W pow2): each sublane row holds L//W
             consecutive image rows of one plane; blocks hold whole planes.
    """
    rpp = (H * W) // L            # flattened rows per plane
    ppb = TR // rpp               # whole planes per block
    packed = L != W
    if ppb > 1:
        assert _is_pow2(rpp), "multi-plane blocks require pow2 rows-per-plane"

    def kernel(pred_ref, label_ref, out_ref):
        p = pred_ref[...].astype(jnp.float32)
        lab = label_ref[...].astype(jnp.float32)

        neg = jnp.float32(-jnp.inf)

        # ---- boundary masks: built once, reused by both pool calls --------
        lane = lax.broadcasted_iota(jnp.int32, (TR, L), 1)
        srow = lax.broadcasted_iota(jnp.int32, (TR, L), 0)
        sub = jnp.bitwise_and(srow, rpp - 1) if ppb > 1 else srow
        if packed:
            w_in = jnp.bitwise_and(lane, W - 1)        # column within image
            m_left = w_in == 0
            m_right = w_in == W - 1
            m_lo = lane < W            # up-neighbour crosses a sublane row
            m_hi = lane >= L - W       # down-neighbour crosses a sublane row
            m_top = jnp.logical_and(sub == 0, m_lo)
            m_bot = jnp.logical_and(sub == rpp - 1, m_hi)
        else:
            m_left = lane == 0
            m_right = lane == W - 1
            m_top = sub == 0
            m_bot = sub == rpp - 1

        # ---- 3x3 max pool, stride 1, pad 1 (-inf padding), separable ------
        def pool3x3(x):
            left = jnp.where(m_left, neg, pltpu.roll(x, shift=1, axis=1))
            right = jnp.where(m_right, neg, pltpu.roll(x, shift=L - 1, axis=1))
            h = jnp.maximum(jnp.maximum(left, x), right)
            if packed:
                a_up = pltpu.roll(h, shift=W, axis=1)
                up_raw = jnp.where(m_lo, pltpu.roll(a_up, shift=1, axis=0), a_up)
                a_dn = pltpu.roll(h, shift=L - W, axis=1)
                dn_raw = jnp.where(m_hi, pltpu.roll(a_dn, shift=TR - 1, axis=0), a_dn)
            else:
                up_raw = pltpu.roll(h, shift=1, axis=0)
                dn_raw = pltpu.roll(h, shift=TR - 1, axis=0)
            up = jnp.where(m_top, neg, up_raw)
            dn = jnp.where(m_bot, neg, dn_raw)
            return jnp.maximum(jnp.maximum(up, h), dn)

        # min_pool = -max_pool(-p); contour = relu(max_pool(min_pool) - min_pool)
        min_pool = -pool3x3(-p)
        contour = jnp.maximum(pool3x3(min_pool) - min_pool, 0.0)  # abs() redundant

        # ---- fused partial reductions (sublane-only; lanes reduced in JAX) -
        out_ref[0:1, :] = jnp.sum(contour, axis=0, keepdims=True)
        out_ref[1:2, :] = jnp.sum(p * (lab - 1.0) ** 2, axis=0, keepdims=True)
        out_ref[2:3, :] = jnp.sum((1.0 - p) * (lab * lab), axis=0, keepdims=True)
        out_ref[3:8, :] = jnp.zeros((5, L), jnp.float32)

    return kernel


def ac_loss_v2(prediction, label, miu=MIU):
    """Pallas implementation of ACLossV2.forward (returns a scalar loss)."""
    B, C, H, W = prediction.shape
    P = B * C

    plan = _plan_fast_layout(P, H, W)
    if plan is not None:
        L, rpp, pad_P, ppb = plan
        TR = ppb * rpp
        num_blocks = pad_P // ppb
        pred2 = prediction.reshape(P * rpp, L)
        lab2 = label.reshape(P * rpp, L)
        if pad_P != P:  # zero planes contribute exactly 0 to all three sums
            pad_rows = (pad_P - P) * rpp
            pred2 = jnp.concatenate(
                [pred2, jnp.zeros((pad_rows, L), pred2.dtype)], axis=0)
            lab2 = jnp.concatenate(
                [lab2, jnp.zeros((pad_rows, L), lab2.dtype)], axis=0)
        kernel = _make_kernel(H, W, L, TR)
        in_spec = pl.BlockSpec((TR, L), lambda i: (i, 0))
        out_spec = pl.BlockSpec((None, 8, L), lambda i: (i, 0, 0))
        grid = (num_blocks,)
        out_L = L
    else:
        # Fallback: one full (H, W) plane per grid step (non-pow2 / tiny planes).
        num_blocks = P
        pred2 = prediction.reshape(P, H, W)
        lab2 = label.reshape(P, H, W)
        kernel = _make_kernel(H, W, W, H)
        in_spec = pl.BlockSpec((None, H, W), lambda i: (i, 0, 0))
        out_spec = pl.BlockSpec((None, 8, W), lambda i: (i, 0, 0))
        grid = (P,)
        out_L = W

    n_elems = int(np.prod(pred2.shape))
    cost = pl.CostEstimate(
        flops=30 * n_elems,          # ~2 pools + region terms per element
        transcendentals=0,
        bytes_accessed=(pred2.size * pred2.dtype.itemsize
                        + lab2.size * lab2.dtype.itemsize
                        + num_blocks * 8 * out_L * 4))

    partials = pl.pallas_call(
        kernel,
        out_shape=jax.ShapeDtypeStruct((num_blocks, 8, out_L), jnp.float32),
        grid=grid,
        in_specs=[in_spec, in_spec],
        out_specs=out_spec,
        compiler_params=pltpu.CompilerParams(
            dimension_semantics=("parallel",),
            vmem_limit_bytes=_VMEM_LIMIT_BYTES),
        cost_estimate=cost,
    )(pred2, lab2)

    # Tiny final reduction on the (num_blocks, 8, L) lane-dense partials.
    sums = jnp.sum(partials, axis=(0, 2))        # (8,)
    length = sums[0]
    region_in = jnp.abs(sums[1])
    region_out = jnp.abs(sums[2])
    return miu * region_in + region_out + length


def ac_loss_v2_ref(prediction, label, miu=MIU):
    """Pure-JAX reference mirroring the PyTorch forward."""
    def maxpool(x):
        return lax.reduce_window(
            x, -jnp.inf, lax.max,
            window_dimensions=(1, 1, 3, 3),
            window_strides=(1, 1, 1, 1),
            padding=[(0, 0), (0, 0), (1, 1), (1, 1)])

    pred = prediction.astype(jnp.float32)
    lab = label.astype(jnp.float32)
    min_pool_x = -maxpool(-pred)
    contour = jnp.maximum(maxpool(min_pool_x) - min_pool_x, 0.0)
    length = jnp.sum(jnp.abs(contour))
    region_in = jnp.abs(jnp.sum(pred * (lab - 1.0) ** 2))
    region_out = jnp.abs(jnp.sum((1.0 - pred) * lab ** 2))
    return miu * region_in + region_out + length


if __name__ == "__main__":
    key = jax.random.PRNGKey(0)
    k1, k2 = jax.random.split(key)

    B, C, H, W = 2, CLASSES, 16, 16
    prediction = jax.random.uniform(k1, (B, C, H, W), dtype=jnp.float32)
    label = (jax.random.uniform(k2, (B, C, H, W)) > 0.5).astype(jnp.float32)

    loss = jax.block_until_ready(ac_loss_v2(prediction, label))
    loss_ref = jax.block_until_ready(ac_loss_v2_ref(prediction, label))

    np.testing.assert_allclose(np.asarray(loss), np.asarray(loss_ref),
                               rtol=1e-4, atol=1e-2)
    print("KERNEL_OK")
</pallas_src>

<mosaic_0001>
module attributes {stable_mosaic.version = 11 : i64} {
  func.func @kernel(%arg0: i32, %arg1: memref<16x128xf32, #tpu.memory_space<vmem>>, %arg2: memref<16x128xf32, #tpu.memory_space<vmem>>, %arg3: memref<1x8x128xf32, #tpu.memory_space<vmem>>) attributes {dimension_semantics = [#tpu.dimension_semantics<parallel>], iteration_bounds = array<i64: 1>, scalar_prefetch = 0 : i64, scratch_operands = 0 : i64, tpu.core_type = #tpu.core_type<tc>, window_params = [{transform_indices = @transform_0, window_bounds = array<i64: 16, 128>}, {transform_indices = @transform_1, window_bounds = array<i64: 16, 128>}, {transform_indices = @transform_2, window_bounds = array<i64: 1, 8, 128>}]} {
    %c0 = arith.constant 0 : index
    %c0_0 = arith.constant 0 : index
    %0 = vector.load %arg1[%c0, %c0_0] : memref<16x128xf32, #tpu.memory_space<vmem>>, vector<16x128xf32>
    %c0_1 = arith.constant 0 : index
    %c0_2 = arith.constant 0 : index
    %1 = vector.load %arg2[%c0_1, %c0_2] : memref<16x128xf32, #tpu.memory_space<vmem>>, vector<16x128xf32>
    %2 = tpu.iota {dimensions = array<i32: 1>} : vector<16x128xi32>
    %3 = tpu.iota {dimensions = array<i32: 0>} : vector<16x128xi32>
    %c1_i32 = arith.constant 1 : i32
    %4 = vector.broadcast %c1_i32 : i32 to vector<16x128xi32>
    %5 = arith.andi %3, %4 : vector<16x128xi32>
    %c15_i32 = arith.constant 15 : i32
    %6 = vector.broadcast %c15_i32 : i32 to vector<16x128xi32>
    %7 = arith.andi %2, %6 : vector<16x128xi32>
    %c0_i32 = arith.constant 0 : i32
    %8 = vector.broadcast %c0_i32 : i32 to vector<16x128xi32>
    %9 = arith.cmpi eq, %7, %8 : vector<16x128xi32>
    %c15_i32_3 = arith.constant 15 : i32
    %10 = vector.broadcast %c15_i32_3 : i32 to vector<16x128xi32>
    %11 = arith.cmpi eq, %7, %10 : vector<16x128xi32>
    %c16_i32 = arith.constant 16 : i32
    %12 = vector.broadcast %c16_i32 : i32 to vector<16x128xi32>
    %13 = arith.cmpi slt, %2, %12 : vector<16x128xi32>
    %c112_i32 = arith.constant 112 : i32
    %14 = vector.broadcast %c112_i32 : i32 to vector<16x128xi32>
    %15 = arith.cmpi sge, %2, %14 : vector<16x128xi32>
    %c0_i32_4 = arith.constant 0 : i32
    %16 = vector.broadcast %c0_i32_4 : i32 to vector<16x128xi32>
    %17 = arith.cmpi eq, %5, %16 : vector<16x128xi32>
    %18 = arith.andi %17, %13 : vector<16x128xi1>
    %c1_i32_5 = arith.constant 1 : i32
    %19 = vector.broadcast %c1_i32_5 : i32 to vector<16x128xi32>
    %20 = arith.cmpi eq, %5, %19 : vector<16x128xi32>
    %21 = arith.andi %20, %15 : vector<16x128xi1>
    %cst = arith.constant 0.000000e+00 : f32
    %22 = vector.broadcast %cst : f32 to vector<16x128xf32>
    %23 = arith.subf %22, %0 : vector<16x128xf32>
    %c1_i32_6 = arith.constant 1 : i32
    %24 = tpu.dynamic_rotate %23 by %c1_i32_6 dim 1 : vector<16x128xf32>, i32 -> vector<16x128xf32>
    %cst_7 = arith.constant 0xFF800000 : f32
    %25 = vector.broadcast %cst_7 : f32 to vector<16x128xf32>
    %26 = arith.select %9, %25, %24 : vector<16x128xi1>, vector<16x128xf32>
    %c127_i32 = arith.constant 127 : i32
    %27 = tpu.dynamic_rotate %23 by %c127_i32 dim 1 : vector<16x128xf32>, i32 -> vector<16x128xf32>
    %cst_8 = arith.constant 0xFF800000 : f32
    %28 = vector.broadcast %cst_8 : f32 to vector<16x128xf32>
    %29 = arith.select %11, %28, %27 : vector<16x128xi1>, vector<16x128xf32>
    %30 = arith.maximumf %26, %23 : vector<16x128xf32>
    %31 = arith.maximumf %30, %29 : vector<16x128xf32>
    %c16_i32_9 = arith.constant 16 : i32
    %32 = tpu.dynamic_rotate %31 by %c16_i32_9 dim 1 : vector<16x128xf32>, i32 -> vector<16x128xf32>
    %c1_i32_10 = arith.constant 1 : i32
    %33 = tpu.dynamic_rotate %32 by %c1_i32_10 dim 0 : vector<16x128xf32>, i32 -> vector<16x128xf32>
    %34 = arith.select %13, %33, %32 : vector<16x128xi1>, vector<16x128xf32>
    %c112_i32_11 = arith.constant 112 : i32
    %35 = tpu.dynamic_rotate %31 by %c112_i32_11 dim 1 : vector<16x128xf32>, i32 -> vector<16x128xf32>
    %c15_i32_12 = arith.constant 15 : i32
    %36 = tpu.dynamic_rotate %35 by %c15_i32_12 dim 0 : vector<16x128xf32>, i32 -> vector<16x128xf32>
    %37 = arith.select %15, %36, %35 : vector<16x128xi1>, vector<16x128xf32>
    %cst_13 = arith.constant 0xFF800000 : f32
    %38 = vector.broadcast %cst_13 : f32 to vector<16x128xf32>
    %39 = arith.select %18, %38, %34 : vector<16x128xi1>, vector<16x128xf32>
    %cst_14 = arith.constant 0xFF800000 : f32
    %40 = vector.broadcast %cst_14 : f32 to vector<16x128xf32>
    %41 = arith.select %21, %40, %37 : vector<16x128xi1>, vector<16x128xf32>
    %42 = arith.maximumf %39, %31 : vector<16x128xf32>
    %43 = arith.maximumf %42, %41 : vector<16x128xf32>
    %cst_15 = arith.constant 0.000000e+00 : f32
    %44 = vector.broadcast %cst_15 : f32 to vector<16x128xf32>
    %45 = arith.subf %44, %43 : vector<16x128xf32>
    %c1_i32_16 = arith.constant 1 : i32
    %46 = tpu.dynamic_rotate %45 by %c1_i32_16 dim 1 : vector<16x128xf32>, i32 -> vector<16x128xf32>
    %cst_17 = arith.constant 0xFF800000 : f32
    %47 = vector.broadcast %cst_17 : f32 to vector<16x128xf32>
    %48 = arith.select %9, %47, %46 : vector<16x128xi1>, vector<16x128xf32>
    %c127_i32_18 = arith.constant 127 : i32
    %49 = tpu.dynamic_rotate %45 by %c127_i32_18 dim 1 : vector<16x128xf32>, i32 -> vector<16x128xf32>
    %cst_19 = arith.constant 0xFF800000 : f32
    %50 = vector.broadcast %cst_19 : f32 to vector<16x128xf32>
    %51 = arith.select %11, %50, %49 : vector<16x128xi1>, vector<16x128xf32>
    %52 = arith.maximumf %48, %45 : vector<16x128xf32>
    %53 = arith.maximumf %52, %51 : vector<16x128xf32>
    %c16_i32_20 = arith.constant 16 : i32
    %54 = tpu.dynamic_rotate %53 by %c16_i32_20 dim 1 : vector<16x128xf32>, i32 -> vector<16x128xf32>
    %c1_i32_21 = arith.constant 1 : i32
    %55 = tpu.dynamic_rotate %54 by %c1_i32_21 dim 0 : vector<16x128xf32>, i32 -> vector<16x128xf32>
    %56 = arith.select %13, %55, %54 : vector<16x128xi1>, vector<16x128xf32>
    %c112_i32_22 = arith.constant 112 : i32
    %57 = tpu.dynamic_rotate %53 by %c112_i32_22 dim 1 : vector<16x128xf32>, i32 -> vector<16x128xf32>
    %c15_i32_23 = arith.constant 15 : i32
    %58 = tpu.dynamic_rotate %57 by %c15_i32_23 dim 0 : vector<16x128xf32>, i32 -> vector<16x128xf32>
    %59 = arith.select %15, %58, %57 : vector<16x128xi1>, vector<16x128xf32>
    %cst_24 = arith.constant 0xFF800000 : f32
    %60 = vector.broadcast %cst_24 : f32 to vector<16x128xf32>
    %61 = arith.select %18, %60, %56 : vector<16x128xi1>, vector<16x128xf32>
    %cst_25 = arith.constant 0xFF800000 : f32
    %62 = vector.broadcast %cst_25 : f32 to vector<16x128xf32>
    %63 = arith.select %21, %62, %59 : vector<16x128xi1>, vector<16x128xf32>
    %64 = arith.maximumf %61, %53 : vector<16x128xf32>
    %65 = arith.maximumf %64, %63 : vector<16x128xf32>
    %66 = arith.subf %65, %45 : vector<16x128xf32>
    %cst_26 = arith.constant 0.000000e+00 : f32
    %67 = vector.broadcast %cst_26 : f32 to vector<16x128xf32>
    %68 = arith.maximumf %66, %67 : vector<16x128xf32>
    %cst_27 = arith.constant dense<0.000000e+00> : vector<128xf32>
    %69 = vector.multi_reduction <add>, %68, %cst_27 [0] : vector<16x128xf32> to vector<128xf32>
    %70 = vector.shape_cast %69 : vector<128xf32> to vector<1x128xf32>
    %c0_28 = arith.constant 0 : index
    %c0_29 = arith.constant 0 : index
    %c0_30 = arith.constant 0 : index
    %71 = vector.load %arg3[%c0_28, %c0_29, %c0_30] : memref<1x8x128xf32, #tpu.memory_space<vmem>>, vector<1x1x128xf32>
    %72 = vector.shape_cast %71 : vector<1x1x128xf32> to vector<1x128xf32>
    %73 = vector.shape_cast %70 : vector<1x128xf32> to vector<1x1x128xf32>
    tpu.vector_store %arg3[%c0_28, %c0_29, %c0_30], %73 {strides = array<i32>} : memref<1x8x128xf32, #tpu.memory_space<vmem>>, vector<1x1x128xf32>,
    %cst_31 = arith.constant 1.000000e+00 : f32
    %74 = vector.broadcast %cst_31 : f32 to vector<16x128xf32>
    %75 = arith.subf %1, %74 : vector<16x128xf32>
    %76 = arith.mulf %75, %75 : vector<16x128xf32>
    %77 = arith.mulf %0, %76 : vector<16x128xf32>
    %cst_32 = arith.constant dense<0.000000e+00> : vector<128xf32>
    %78 = vector.multi_reduction <add>, %77, %cst_32 [0] : vector<16x128xf32> to vector<128xf32>
    %79 = vector.shape_cast %78 : vector<128xf32> to vector<1x128xf32>
    %c0_33 = arith.constant 0 : index
    %c1 = arith.constant 1 : index
    %c0_34 = arith.constant 0 : index
    %80 = vector.load %arg3[%c0_33, %c1, %c0_34] : memref<1x8x128xf32, #tpu.memory_space<vmem>>, vector<1x1x128xf32>
    %81 = vector.shape_cast %80 : vector<1x1x128xf32> to vector<1x128xf32>
    %82 = vector.shape_cast %79 : vector<1x128xf32> to vector<1x1x128xf32>
    tpu.vector_store %arg3[%c0_33, %c1, %c0_34], %82 {strides = array<i32>} : memref<1x8x128xf32, #tpu.memory_space<vmem>>, vector<1x1x128xf32>,
    %cst_35 = arith.constant 1.000000e+00 : f32
    %83 = vector.broadcast %cst_35 : f32 to vector<16x128xf32>
    %84 = arith.subf %83, %0 : vector<16x128xf32>
    %85 = arith.mulf %1, %1 : vector<16x128xf32>
    %86 = arith.mulf %84, %85 : vector<16x128xf32>
    %cst_36 = arith.constant dense<0.000000e+00> : vector<128xf32>
    %87 = vector.multi_reduction <add>, %86, %cst_36 [0] : vector<16x128xf32> to vector<128xf32>
    %88 = vector.shape_cast %87 : vector<128xf32> to vector<1x128xf32>
    %c0_37 = arith.constant 0 : index
    %c2 = arith.constant 2 : index
    %c0_38 = arith.constant 0 : index
    %89 = vector.load %arg3[%c0_37, %c2, %c0_38] : memref<1x8x128xf32, #tpu.memory_space<vmem>>, vector<1x1x128xf32>
    %90 = vector.shape_cast %89 : vector<1x1x128xf32> to vector<1x128xf32>
    %91 = vector.shape_cast %88 : vector<1x128xf32> to vector<1x1x128xf32>
    tpu.vector_store %arg3[%c0_37, %c2, %c0_38], %91 {strides = array<i32>} : memref<1x8x128xf32, #tpu.memory_space<vmem>>, vector<1x1x128xf32>,
    %cst_39 = arith.constant 0.000000e+00 : f32
    %92 = vector.broadcast %cst_39 : f32 to vector<5x128xf32>
    %c0_40 = arith.constant 0 : index
    %c3 = arith.constant 3 : index
    %c0_41 = arith.constant 0 : index
    %93 = vector.load %arg3[%c0_40, %c3, %c0_41] : memref<1x8x128xf32, #tpu.memory_space<vmem>>, vector<1x5x128xf32>
    %94 = vector.shape_cast %93 : vector<1x5x128xf32> to vector<5x128xf32>
    %95 = vector.shape_cast %92 : vector<5x128xf32> to vector<1x5x128xf32>
    tpu.vector_store %arg3[%c0_40, %c3, %c0_41], %95 {strides = array<i32>} : memref<1x8x128xf32, #tpu.memory_space<vmem>>, vector<1x5x128xf32>,
    return
  }
  func.func @transform_0(%arg0: i32) -> (i32, i32) {
    %c0_i32 = arith.constant 0 : i32
    %c0_i32_0 = arith.constant 0 : i32
    return %arg0, %c0_i32 : i32, i32
  }
  func.func @transform_1(%arg0: i32) -> (i32, i32) {
    %c0_i32 = arith.constant 0 : i32
    %c0_i32_0 = arith.constant 0 : i32
    return %arg0, %c0_i32 : i32, i32
  }
  func.func @transform_2(%arg0: i32) -> (i32, i32, i32) {
    %c0_i32 = arith.constant 0 : i32
    %c0_i32_0 = arith.constant 0 : i32
    %c0_i32_1 = arith.constant 0 : i32
    return %arg0, %c0_i32, %c0_i32_0 : i32, i32, i32
  }
}

</mosaic_0001>

<bundles_post_ra>
// kernel: tpu_custom_call.1
= control target key start
LH: loop header
LB: loop body
LE: loop exit
PB: predicated region body
PF: predicated region fallthrough
CT: control target
= control target key end

     0   :  { %7 = vsyncpa [#allocation3], 0  ;;  %s503_s0 = inlined_call_operand.hbm [shape: f32[16,128], index: 0, kind: input, shape index: {}]   ;;  %s504_s1 = inlined_call_operand.hbm [shape: f32[16,128], index: 1, kind: input, shape index: {}]   ;;  %s505_s2 = inlined_call_operand.hbm [shape: f32[1,8,128], index: 2, kind: output, shape index: {}]  }
   0x1   :  { %8 = vsyncpa [#allocation6], 0 }
   0x2   :  { %9 = vsyncpa [#allocation4], 0  ;;  %s299_s9 = smov [#allocation2]   ;;  %s227_s13 = scalar_lea.hbm %s503_s0, 256 }
   0x3   :  { %s15_s10 = sshll.u32 %s299_s9, 4  ;;  %p228_p0 = scmp.ne.s32.totalorder %s503_s0, %s227_s13  ;;  %s16_s10 = int_to_ptr.vmem [resolvable:$true] %s15_s10 }
   0x4   :  { %p231_p1 = scmp.lt.u32.totalorder %s227_s13, %s503_s0 }
   0x6   :  { %p233_p2 = pnand %p231_p1, %p228_p0 }
   0x8   :  { %236 = shalt.err (!%p233_p2)
}
   0x9   :  { %s237_s18 = scalar_lea.vmem %s16_s10, 256  ;;  %p242_p4 = scmp.lt.s32.totalorder %s16_s10, %s16_s10 }
   0xa   :  { %p238_p3 = scmp.ne.s32.totalorder %s16_s10, %s237_s18  ;;  %p243_p5 = scmp.lt.s32.totalorder %s237_s18, %s237_s18 }
   0xc   :  { %p244_p6 = por %p243_p5, %p242_p4 }
   0xe   :  { %p245_p7 = pnand %p244_p6, %p238_p3 }
  0x10   :  { %248 = shalt.err (!%p245_p7)
}
  0x11   :  { %s300_s19 = smov 128   ;;  %s301_s20 = smov 8  }
  0x12   :  { %21 = dma.hbm_to_vmem [thread:$0]  %s503_s0, 256, %s16_s10, [#allocation3], %s300_s19, %s300_s19, %s301_s20  }
  0x13   :  { %s302_s23 = smov [#allocation5]   ;;  %s249_s27 = scalar_lea.hbm %s504_s1, 256 }
  0x14   :  { %s27_s24 = sshll.u32 %s302_s23, 4  ;;  %p250_p8 = scmp.ne.s32.totalorder %s504_s1, %s249_s27  ;;  %s28_s24 = int_to_ptr.vmem [resolvable:$true] %s27_s24 }
  0x15   :  { %p253_p9 = scmp.lt.u32.totalorder %s249_s27, %s504_s1 }
  0x17   :  { %p255_p10 = pnand %p253_p9, %p250_p8 }
  0x19   :  { %258 = shalt.err (!%p255_p10)
}
  0x1a   :  { %s259_s4 = scalar_lea.vmem %s28_s24, 256  ;;  %p264_p12 = scmp.lt.s32.totalorder %s28_s24, %s28_s24 }
  0x1b   :  { %p260_p11 = scmp.ne.s32.totalorder %s28_s24, %s259_s4  ;;  %p265_p13 = scmp.lt.s32.totalorder %s259_s4, %s259_s4 }
  0x1d   :  { %p266_p0 = por %p265_p13, %p264_p12 }
  0x1f   :  { %p267_p1 = pnand %p266_p0, %p260_p11 }
  0x21   :  { %270 = shalt.err (!%p267_p1)
}
  0x22   :  { %33 = dma.hbm_to_vmem [thread:$0]  %s504_s1, 256, %s28_s24, [#allocation6], %s300_s19, %s300_s19, %s301_s20  }
  0x23   :  { %293 = dma.done.wait [#allocation3], 256  }
  0x24   :  { %294 = vsyncadd [#allocation3], 4294967040 }
  0x25   :  { %295 = dma.done.wait [#allocation6], 256  }
  0x26   :  { %296 = vsyncadd [#allocation6], 4294967040  ;;  %v40_v0 = vld [vmem:[#allocation2] sm:$0xff]  ;;  %v42_v1 = vld [vmem:[#allocation5] sm:$0xff]  ;;  %s303_s6 = smov 1   ;;  %s304_s1 = smov 127   ;;  %v44_v20 = vlaneseq }
  0x27   :  { %v41_v2 = vld [vmem:[#allocation2 + $0x8] sm:$0xff]  ;;  %v64_v3 = vsub.f32 0.0, %v40_v0  ;;  %v215_v4 = vadd.f32 -1.0, %v42_v1  ;;  %v184_v5 = vsub.f32 1.0, %v40_v0  ;;  %v186_v6 = vmul.f32 %v42_v1, %v42_v1  ;;  %v43_v7 = vld [vmem:[#allocation5 + $0x8] sm:$0xff]  ;;  %s305_s7 = smov 16  }
  0x28   :  { %v216_v8 = vadd.f32 -1.0, %v43_v7  ;;  %v185_v9 = vsub.f32 1.0, %v41_v2  ;;  %v187_v10 = vmul.f32 %v43_v7, %v43_v7  ;;  %v65_v13 = vsub.f32 0.0, %v41_v2  ;;  %s306_s8 = smov 112   ;;  %s308_s9 = smov [#allocation7]  }
  0x29   :  { %v172_v11 = vmul.f32 %v215_v4, %v215_v4  ;;  %v188_v12 = vmul.f32 %v186_v6, %v184_v5  ;;  %66 = vrot.lane.b32.xlu0 %v64_v3, %s303_s6  ;;  %72 = vrot.lane.b32.xlu1 %v64_v3, %s304_s1  ;;  %v356_v21 = vand.u32 127, %v44_v20  ;;  %v379_v37 = vshrl.u32 %v44_v20, 7  ;;  %s205_s10 = sshll.u32 %s308_s9, 4  ;;  %s206_s10 = int_to_ptr.vmem [resolvable:$true] %s205_s10 }
  0x2a   :  { %v173_v14 = vmul.f32 %v216_v8, %v216_v8  ;;  %v189_v15 = vmul.f32 %v187_v10, %v185_v9  ;;  %s271_s11 = scalar_lea.vmem %s206_s10, 128  ;;  %p276_p3 = scmp.lt.s32.totalorder %s206_s10, %s206_s10 }
  0x2b   :  { %v174_v16 = vmul.f32 %v172_v11, %v40_v0  ;;  %v51_v22 = vand.u32 15, %v356_v21  ;;  %v48_v38 = vadd.s32 8, %v379_v37  ;;  %v49_v39 = vand.u32 1, %v379_v37  ;;  %p272_p2 = scmp.ne.s32.totalorder %s206_s10, %s271_s11  ;;  %p277_p4 = scmp.lt.s32.totalorder %s271_s11, %s271_s11 }
  0x2c   :  { %v175_v17 = vmul.f32 %v173_v14, %v41_v2  ;;  %v350_v18 = vadd.f32 %v189_v15, %v188_v12  ;;  %vm54_vm2 = vcmp.lt.s32.totalorder %v356_v21, 16  ;;  %vm88_vm5 = vcmp.lt.s32.totalorder %v379_v37, 1 }
  0x2d   :  { %68 = vrot.lane.b32.xlu0 %v65_v13, %s303_s6  ;;  %74 = vrot.lane.b32.xlu1 %v65_v13, %s304_s1  ;;  %vm359_vm0 = vcmp.eq.s32.totalorder %v51_v22, 0  ;;  %vm363_vm1 = vcmp.eq.s32.totalorder %v51_v22, 15  ;;  %v50_v40 = vand.u32 1, %v48_v38  ;;  %vm56_vm3 = vcmp.eq.s32.totalorder %v49_v39, 0  ;;  %p278_p5 = por %p277_p4, %p276_p3 }
  0x2e   :  { %v354_v19 = vadd.f32 %v175_v17, %v174_v16  ;;  %vm387_vm6 = vmand %vm56_vm3, %vm54_vm2  ;;  %vm55_vm8 = vcmp.ge.s32.totalorder %v356_v21, 112  ;;  %vm60_vm10 = vcmp.eq.s32.totalorder %v49_v39, 1  ;;  %vm99_vm11 = vcmp.lt.s32.totalorder %v379_v37, 7 }
  0x2f   :  { %vm57_vm4 = vcmp.eq.s32.totalorder %v50_v40, 0  ;;  %vm61_vm9 = vcmp.eq.s32.totalorder %v50_v40, 1  ;;  %vm419_vm13 = vmand %vm60_vm10, %vm55_vm8  ;;  %v191_v23 = vrot.slane %v350_v18, 4  ;;  %p279_p6 = pnand %p278_p5, %p272_p2 }
  0x30   :  { %vm393_vm7 = vmand %vm57_vm4, %vm54_vm2  ;;  %v177_v22 = vrot.slane %v354_v19, 4 }
  0x31   :  { %vm413_vm12 = vmand %vm61_vm9, %vm55_vm8 }
  0x9b   :  { %v67_v25 = vpop.permute.xlu0 %66  ;;  %v73_v26 = vpop.permute.xlu1 %72 }
  0x9c   :  { %v70_v27 = vsel %vm359_vm0, -inf, %v67_v25  ;;  %v76_v28 = vsel %vm363_vm1, -inf, %v73_v26  ;;  %v178_v25 = vadd.f32 %v177_v22, %v354_v19  ;;  %v192_v26 = vadd.f32 %v191_v23, %v350_v18 }
  0x9d   :  { %v78_v29 = vmax.f32 %v70_v27, %v64_v3 }
  0x9e   :  { %v179_v24 = vrot.slane %v178_v25, 2  ;;  %v193_v27 = vrot.slane %v192_v26, 2 }
  0x9f   :  { %v80_v30 = vmax.f32 %v78_v29, %v76_v28  ;;  %v69_v31 = vpop.permute.xlu0 %68  ;;  %v75_v32 = vpop.permute.xlu1 %74 }
  0xa0   :  { %v71_v33 = vsel %vm359_vm0, -inf, %v69_v31  ;;  %v77_v34 = vsel %vm363_vm1, -inf, %v75_v32  ;;  %v180_v28 = vadd.f32 %v179_v24, %v178_v25  ;;  %v194_v29 = vadd.f32 %v193_v27, %v192_v26 }
  0xa1   :  { %v79_v35 = vmax.f32 %v71_v33, %v65_v13  ;;  %82 = vrot.lane.b32.xlu0 %v80_v30, %s305_s7 }
  0xa2   :  { %v195_v31 = vrot.slane %v194_v29, 1 }
  0xa3   :  { %v81_v36 = vmax.f32 %v79_v35, %v77_v34  ;;  %v307_v34 = vmov 0.0  }
  0xa4   :  { %v196_v33 = vadd.f32 %v195_v31, %v194_v29  ;;  %198 = vst [vmem:[#allocation7 + $0x3] sm:$0x1f] %v307_v34 }
  0xa5   :  { %93 = vrot.lane.b32.xlu0 %v80_v30, %s306_s8  ;;  %84 = vrot.lane.b32.xlu1 %v81_v36, %s305_s7 }
  0xa6   :  { %197 = vst [vmem:[#allocation7 + $0x2] sm:$0x1] %v196_v33 }
  0xa9   :  { %95 = vrot.lane.b32.xlu1 %v81_v36, %s306_s8 }
 0x113   :  { %v83_v41 = vpop.permute.xlu0 %82 }
 0x114   :  { %v86_v43 = vrot.slane %v83_v41, 7 }
 0x117   :  { %v85_v42 = vpop.permute.xlu1 %84  ;;  %v94_v47 = vpop.permute.xlu0 %93 }
 0x118   :  { %v87_v45 = vrot.slane %v85_v42, 7  ;;  %v97_v55 = vrot.slane %v94_v47, 1 }
 0x11a   :  { %v89_v48 = vsel %vm88_vm5, %v86_v43, %v87_v45  ;;  %v90_v49 = vsel %vm88_vm5, %v87_v45, %v86_v43 }
 0x11b   :  { %v91_v50 = vsel %vm54_vm2, %v90_v49, %v83_v41  ;;  %v92_v51 = vsel %vm54_vm2, %v89_v48, %v85_v42  ;;  %v96_v52 = vpop.permute.xlu1 %95 }
 0x11c   :  { %v104_v53 = vsel %vm387_vm6, -inf, %v91_v50  ;;  %v105_v54 = vsel %vm393_vm7, -inf, %v92_v51  ;;  %v98_v57 = vrot.slane %v96_v52, 1 }
 0x11d   :  { %v109_v61 = vmax.f32 %v105_v54, %v81_v36  ;;  %v108_v0 = vmax.f32 %v104_v53, %v80_v30  ;;  %v181_v30 = vrot.slane %v180_v28, 1 }
 0x11e   :  { %v100_v59 = vsel %vm99_vm11, %v97_v55, %v98_v57  ;;  %v101_v60 = vsel %vm99_vm11, %v98_v57, %v97_v55 }
 0x11f   :  { %v102_v62 = vsel %vm55_vm8, %v100_v59, %v94_v47  ;;  %v103_v63 = vsel %vm55_vm8, %v101_v60, %v96_v52  ;;  %v182_v32 = vadd.f32 %v181_v30, %v180_v28 }
 0x120   :  { %v107_v1 = vsel %vm413_vm12, -inf, %v103_v63  ;;  %v106_v2 = vsel %vm419_vm13, -inf, %v102_v62 }
 0x121   :  { %v111_v3 = vmax.f32 %v109_v61, %v107_v1  ;;  %v110_v4 = vmax.f32 %v108_v0, %v106_v2  ;;  %183 = vst [vmem:[#allocation7 + $0x1] sm:$0x1] %v182_v32 }
 0x123   :  { %v435_v5 = vsub.f32 0.0, %v111_v3  ;;  %v437_v6 = vsub.f32 0.0, %v110_v4 }
 0x125   :  { %116 = vrot.lane.b32.xlu1 %v435_v5, %s303_s6  ;;  %114 = vrot.lane.b32.xlu0 %v437_v6, %s303_s6 }
 0x129   :  { %122 = vrot.lane.b32.xlu1 %v435_v5, %s304_s1  ;;  %120 = vrot.lane.b32.xlu0 %v437_v6, %s304_s1 }
 0x197   :  { %v117_v7 = vpop.permute.xlu1 %116  ;;  %v115_v8 = vpop.permute.xlu0 %114 }
 0x198   :  { %v119_v9 = vsel %vm359_vm0, -inf, %v117_v7  ;;  %v118_v10 = vsel %vm359_vm0, -inf, %v115_v8 }
 0x199   :  { %v127_v11 = vmax.f32 %v119_v9, %v435_v5  ;;  %v126_v12 = vmax.f32 %v118_v10, %v437_v6 }
 0x19b   :  { %v123_v13 = vpop.permute.xlu1 %122  ;;  %v121_v14 = vpop.permute.xlu0 %120 }
 0x19c   :  { %v125_v15 = vsel %vm363_vm1, -inf, %v123_v13  ;;  %v124_v16 = vsel %vm363_vm1, -inf, %v121_v14 }
 0x19d   :  { %v129_v17 = vmax.f32 %v127_v11, %v125_v15  ;;  %v128_v20 = vmax.f32 %v126_v12, %v124_v16 }
 0x19f   :  { %132 = vrot.lane.b32.xlu1 %v129_v17, %s305_s7  ;;  %130 = vrot.lane.b32.xlu0 %v128_v20, %s305_s7 }
 0x1a3   :  { %142 = vrot.lane.b32.xlu1 %v129_v17, %s306_s8  ;;  %140 = vrot.lane.b32.xlu0 %v128_v20, %s306_s8 }
 0x211   :  { %v133_v35 = vpop.permute.xlu1 %132  ;;  %v131_v19 = vpop.permute.xlu0 %130 }
 0x212   :  { %v135_v36 = vrot.slane %v133_v35, 7  ;;  %v134_v38 = vrot.slane %v131_v19, 7 }
 0x214   :  { %v136_v39 = vsel %vm88_vm5, %v134_v38, %v135_v36  ;;  %v137_v18 = vsel %vm88_vm5, %v135_v36, %v134_v38 }
 0x215   :  { %v138_v40 = vsel %vm54_vm2, %v137_v18, %v131_v19  ;;  %v139_v41 = vsel %vm54_vm2, %v136_v39, %v133_v35  ;;  %v143_v42 = vpop.permute.xlu1 %142  ;;  %v141_v43 = vpop.permute.xlu0 %140 }
 0x216   :  { %v150_v45 = vsel %vm387_vm6, -inf, %v138_v40  ;;  %v151_v47 = vsel %vm393_vm7, -inf, %v139_v41  ;;  %v145_v48 = vrot.slane %v143_v42, 1  ;;  %v144_v49 = vrot.slane %v141_v43, 1 }
 0x217   :  { %v154_v52 = vmax.f32 %v150_v45, %v128_v20  ;;  %v155_v53 = vmax.f32 %v151_v47, %v129_v17 }
 0x218   :  { %v146_v50 = vsel %vm99_vm11, %v144_v49, %v145_v48  ;;  %v147_v51 = vsel %vm99_vm11, %v145_v48, %v144_v49 }
 0x219   :  { %v148_v54 = vsel %vm55_vm8, %v146_v50, %v141_v43  ;;  %v149_v44 = vsel %vm55_vm8, %v147_v51, %v143_v42 }
 0x21a   :  { %v152_v46 = vsel %vm419_vm13, -inf, %v148_v54  ;;  %v153_v55 = vsel %vm413_vm12, -inf, %v149_v44 }
 0x21b   :  { %v156_v57 = vmax.f32 %v154_v52, %v152_v46  ;;  %v157_v59 = vmax.f32 %v155_v53, %v153_v55 }
 0x21d   :  { %v158_v60 = vsub.f32 %v156_v57, %v437_v6  ;;  %v159_v37 = vsub.f32 %v157_v59, %v435_v5 }
 0x21f   :  { %v160_v61 = vmax.f32 %v158_v60, 0.0  ;;  %v161_v62 = vmax.f32 %v159_v37, 0.0 }
 0x221   :  { %v162_v63 = vadd.f32 %v161_v62, %v160_v61 }
 0x223   :  { %v163_v0 = vrot.slane %v162_v63, 4 }
 0x225   :  { %v164_v1 = vadd.f32 %v163_v0, %v162_v63 }
 0x227   :  { %v165_v2 = vrot.slane %v164_v1, 2 }
 0x229   :  { %v166_v21 = vadd.f32 %v165_v2, %v164_v1 }
 0x22b   :  { %v167_v58 = vrot.slane %v166_v21, 1 }
 0x22d   :  { %v168_v3 = vadd.f32 %v167_v58, %v166_v21 }
 0x22f   :  { %169 = vst [vmem:[#allocation7] sm:$0x1] %v168_v3 }
 0x230   :  { %282 = shalt.err (!%p279_p6)
}
 0x231   :  { %s283_s14 = scalar_lea.hbm %s505_s2, 128 }
 0x232   :  { %p284_p7 = scmp.ne.s32.totalorder %s505_s2, %s283_s14  ;;  %p287_p8 = scmp.lt.u32.totalorder %s283_s14, %s505_s2 }
 0x234   :  { %p289_p9 = pnand %p287_p8, %p284_p7 }
 0x236   :  { %292 = shalt.err (!%p289_p9)
}
 0x237   :  { %208 = dma.vmem_to_hbm [thread:$0]  %s206_s10, 128, %s505_s2, [#allocation4]  }
 0x238   :  { %297 = dma.done.wait [#allocation4], 128  }
 0x239   :  { %298 = vsyncadd [#allocation4], 4294967168 }
 0x23a   :  { %212 = vsyncpa [#allocation3], 1 }
 0x23b   :  { %213 = vsyncpa [#allocation6], 1 }
 0x23c   :  { %214 = vsyncpa [#allocation4], 1 }

</bundles_post_ra>
